<compile_context>
chip_gen: v7x
topology: tpu7x:2x2x1
jax: 0.10.0
libtpu: 0.0.40
codegen_flags: <defaults>
</compile_context>

<pallas_src>
import jax
import jax.numpy as jnp
from jax.experimental import pallas as pl
from jax.experimental.pallas import tpu as pltpu


_TARGET_TILE_BYTES = 4 * 1024 * 1024   # ~4 MiB tile -> ~16 MiB in flight (2 in + 2 out bufs)
_VMEM_LIMIT_BYTES = 32 * 1024 * 1024   # explicit scoped-VMEM budget, safe on v5e/v6e/v7x
_MAX_LANES = 2048                      # widest lane-dense slab considered (multiple of 128)
_MIN_SPLIT_BYTES = 2 * 1024 * 1024     # only force >=2 grid steps for tensors >= this


def _round_up(x, m):
    return ((x + m - 1) // m) * m


def _h_swish_kernel(x_ref, o_ref):
    x = x_ref[...]
    # h_sigmoid(x) = relu6(x + 3) / 6 ; h_swish(x) = x * h_sigmoid(x)
    hs = jnp.clip(x + 3.0, 0.0, 6.0) * (1.0 / 6.0)
    o_ref[...] = (x * hs).astype(o_ref.dtype)


def _choose_exact_layout(total, itemsize, row_align):
    """Return (rows, cols, tile_rows) with rows*cols == total and tile_rows | rows,
    so no padding or output slicing is needed.  Returns None if impossible."""
    if total % 128 != 0:
        return None

    # Widest multiple-of-128 column count (<= _MAX_LANES) that divides total.
    q = total // 128
    d_max = min(q, _MAX_LANES // 128)
    cols = 128
    for d in range(d_max, 0, -1):
        if q % d == 0:
            cols = 128 * d
            break
    rows = total // cols

    # Tile-row target: constant tile *bytes* across dtypes (~_TARGET_TILE_BYTES).
    tr_cap = max(row_align,
                 (_TARGET_TILE_BYTES // (cols * itemsize)) // row_align * row_align)

    def best_aligned_divisor(limit):
        t = min(limit, rows) // row_align * row_align
        while t >= row_align:
            if rows % t == 0:
                return t
            t -= row_align
        return None

    tr = best_aligned_divisor(tr_cap)
    if tr is None:
        if rows * cols * itemsize <= _TARGET_TILE_BYTES:
            tr = rows  # single full-extent tile (always a legal block shape)
        else:
            return None  # no safe aligned split of this factorization -> padded path

    # Prefer >= 2 grid steps for non-trivial tensors (v7x has 2 TensorCores).
    if rows // tr < 2 and total * itemsize >= _MIN_SPLIT_BYTES:
        tr2 = best_aligned_divisor(rows // 2)
        if tr2 is not None:
            tr = tr2

    return rows, cols, tr


def _choose_padded_layout(total, itemsize, row_align):
    """Fallback layout that may require padding the flat tensor."""
    cols = min(_MAX_LANES, _round_up(total, 128))
    rows = -(-total // cols)  # ceil div
    tr_cap = max(row_align,
                 (_TARGET_TILE_BYTES // (cols * itemsize)) // row_align * row_align)
    tr = min(_round_up(rows, row_align), tr_cap)
    if tr >= rows:
        tr = rows            # full-extent block, no row padding
        padded_rows = rows
    else:
        padded_rows = _round_up(rows, tr)
    return rows, cols, tr, padded_rows


def h_swish(x):
    """Applies h_swish elementwise to any-shaped tensor via a Pallas TPU kernel."""
    orig_shape = x.shape
    dtype = x.dtype
    total = x.size

    if total == 0:
        return x

    itemsize = jnp.dtype(dtype).itemsize
    assert itemsize in (1, 2, 4), f"unsupported dtype for h_swish kernel: {dtype}"
    row_align = {4: 8, 2: 16, 1: 32}[itemsize]

    flat = x.reshape(-1)

    exact = _choose_exact_layout(total, itemsize, row_align)
    if exact is not None:
        rows, cols, tr = exact
        padded_rows = rows
        needs_pad = False
    else:
        rows, cols, tr, padded_rows = _choose_padded_layout(total, itemsize, row_align)
        needs_pad = (padded_rows * cols != total)
        if needs_pad:
            flat = jnp.pad(flat, (0, padded_rows * cols - total))

    x2d = flat.reshape(padded_rows, cols)
    grid = (padded_rows // tr,)

    cost = pl.CostEstimate(
        flops=4 * padded_rows * cols,
        transcendentals=0,
        bytes_accessed=2 * padded_rows * cols * itemsize,
    )

    out2d = pl.pallas_call(
        _h_swish_kernel,
        out_shape=jax.ShapeDtypeStruct((padded_rows, cols), dtype),
        grid_spec=pltpu.PrefetchScalarGridSpec(
            num_scalar_prefetch=0,
            grid=grid,
            in_specs=[pl.BlockSpec((tr, cols), lambda i: (i, 0))],
            out_specs=pl.BlockSpec((tr, cols), lambda i: (i, 0)),
        ),
        compiler_params=pltpu.CompilerParams(
            dimension_semantics=("parallel",),
            vmem_limit_bytes=_VMEM_LIMIT_BYTES,
            # Let XLA fuse the producer pad into the pallas_call input instead
            # of materializing a padded HBM copy (only relevant on the ragged path).
            allow_input_fusion=[True] if needs_pad else None,
        ),
        cost_estimate=cost,
    )(x2d)

    if needs_pad:
        return out2d.reshape(-1)[:total].reshape(orig_shape)
    return out2d.reshape(orig_shape)


def _h_swish_ref(x):
    return x * (jnp.clip(x + 3.0, 0.0, 6.0) / 6.0)


if __name__ == "__main__":
    key = jax.random.PRNGKey(0)

    # Primary input consistent with the module's forward: NCHW, batch=2, C=4, H=W=16.
    x = jax.random.normal(key, (2, 4, 16, 16), dtype=jnp.float32) * 4.0
    out = jax.block_until_ready(h_swish(x))
    ref = _h_swish_ref(x)
    assert out.shape == x.shape and out.dtype == x.dtype
    assert jnp.allclose(out, ref, atol=1e-6, rtol=1e-6)

    # Larger f32 input: exercises the multi-step exact (no pad / no slice) path.
    k1, k2 = jax.random.split(key)
    x_big = jax.random.normal(k1, (2, 64, 64, 64), dtype=jnp.float32) * 4.0
    out_big = jax.block_until_ready(h_swish(x_big))
    assert jnp.allclose(out_big, _h_swish_ref(x_big), atol=1e-6, rtol=1e-6)

    # Ragged size: exercises the padded fallback path (size not a multiple of 128).
    x_ragged = jax.random.normal(k2, (3, 5, 7), dtype=jnp.float32) * 4.0
    out_ragged = jax.block_until_ready(h_swish(x_ragged))
    assert out_ragged.shape == x_ragged.shape
    assert jnp.allclose(out_ragged, _h_swish_ref(x_ragged), atol=1e-6, rtol=1e-6)

    # bf16 input: exercises dtype-scaled tiling.
    x_bf16 = (jax.random.normal(key, (2, 4, 16, 16), dtype=jnp.float32) * 4.0).astype(jnp.bfloat16)
    out_bf16 = jax.block_until_ready(h_swish(x_bf16))
    assert out_bf16.dtype == jnp.bfloat16
    assert jnp.allclose(out_bf16.astype(jnp.float32),
                        _h_swish_ref(x_bf16.astype(jnp.float32)), atol=3e-2, rtol=3e-2)

    # Empty tensor guard (previous version divided by zero here).
    x_empty = jnp.zeros((0, 4), dtype=jnp.float32)
    assert h_swish(x_empty).shape == (0, 4)

    print("KERNEL_OK")
</pallas_src>

<mosaic_0001>
module attributes {stable_mosaic.version = 11 : i64} {
  func.func @_h_swish_kernel(%arg0: i32, %arg1: memref<1x2048xf32, #tpu.memory_space<vmem>>, %arg2: memref<1x2048xf32, #tpu.memory_space<vmem>>) attributes {dimension_semantics = [#tpu.dimension_semantics<parallel>], iteration_bounds = array<i64: 1>, scalar_prefetch = 0 : i64, scratch_operands = 0 : i64, tpu.core_type = #tpu.core_type<tc>, window_params = [{transform_indices = @transform_0, window_bounds = array<i64: 1, 2048>}, {transform_indices = @transform_1, window_bounds = array<i64: 1, 2048>}]} {
    %c0 = arith.constant 0 : index
    %c0_0 = arith.constant 0 : index
    %0 = vector.load %arg1[%c0, %c0_0] : memref<1x2048xf32, #tpu.memory_space<vmem>>, vector<1x2048xf32>
    %cst = arith.constant 3.000000e+00 : f32
    %1 = vector.broadcast %cst : f32 to vector<1x2048xf32>
    %2 = arith.addf %0, %1 : vector<1x2048xf32>
    %cst_1 = arith.constant 0.000000e+00 : f32
    %cst_2 = arith.constant 6.000000e+00 : f32
    %3 = vector.broadcast %cst_1 : f32 to vector<1x2048xf32>
    %4 = arith.maximumf %3, %2 : vector<1x2048xf32>
    %5 = vector.broadcast %cst_2 : f32 to vector<1x2048xf32>
    %6 = arith.minimumf %5, %4 : vector<1x2048xf32>
    %cst_3 = arith.constant 0.166666672 : f32
    %7 = vector.broadcast %cst_3 : f32 to vector<1x2048xf32>
    %8 = arith.mulf %6, %7 : vector<1x2048xf32>
    %9 = arith.mulf %0, %8 : vector<1x2048xf32>
    %c0_4 = arith.constant 0 : index
    %c0_5 = arith.constant 0 : index
    %10 = vector.load %arg2[%c0_4, %c0_5] : memref<1x2048xf32, #tpu.memory_space<vmem>>, vector<1x2048xf32>
    tpu.vector_store %arg2[%c0_4, %c0_5], %9 {strides = array<i32>} : memref<1x2048xf32, #tpu.memory_space<vmem>>, vector<1x2048xf32>,
    return
  }
  func.func @transform_0(%arg0: i32) -> (i32, i32) {
    %c0_i32 = arith.constant 0 : i32
    %c0_i32_0 = arith.constant 0 : i32
    return %arg0, %c0_i32 : i32, i32
  }
  func.func @transform_1(%arg0: i32) -> (i32, i32) {
    %c0_i32 = arith.constant 0 : i32
    %c0_i32_0 = arith.constant 0 : i32
    return %arg0, %c0_i32 : i32, i32
  }
}

</mosaic_0001>

<bundles_post_ra>
// kernel: tpu_custom_call.1
= control target key start
LH: loop header
LB: loop body
LE: loop exit
PB: predicated region body
PF: predicated region fallthrough
CT: control target
= control target key end

     0   :  { %6 = vsyncpa [#allocation3], 0  ;;  %s136_s0 = inlined_call_operand.hbm [shape: f32[1,2048], index: 0, kind: input, shape index: {}]   ;;  %s137_s1 = inlined_call_operand.hbm [shape: f32[1,2048], index: 1, kind: output, shape index: {}]  }
   0x1   :  { %7 = vsyncpa [#allocation4], 0  ;;  %s100_s6 = smov [#allocation2]   ;;  %s52_s10 = scalar_lea.hbm %s136_s0, 256 }
   0x2   :  { %s14_s7 = sshll.u32 %s100_s6, 4  ;;  %p53_p0 = scmp.ne.s32.totalorder %s136_s0, %s52_s10  ;;  %s15_s7 = int_to_ptr.vmem [resolvable:$true] %s14_s7 }
   0x3   :  { %p56_p1 = scmp.lt.u32.totalorder %s52_s10, %s136_s0 }
   0x5   :  { %p58_p2 = pnand %p56_p1, %p53_p0 }
   0x7   :  { %61 = shalt.err (!%p58_p2)
}
   0x8   :  { %s62_s15 = scalar_lea.vmem %s15_s7, 256  ;;  %p67_p4 = scmp.lt.s32.totalorder %s15_s7, %s15_s7 }
   0x9   :  { %p63_p3 = scmp.ne.s32.totalorder %s15_s7, %s62_s15  ;;  %p68_p5 = scmp.lt.s32.totalorder %s62_s15, %s62_s15 }
   0xb   :  { %p69_p6 = por %p68_p5, %p67_p4 }
   0xd   :  { %p70_p7 = pnand %p69_p6, %p63_p3 }
   0xf   :  { %73 = shalt.err (!%p70_p7)
}
  0x10   :  { %17 = dma.hbm_to_vmem [thread:$0]  %s136_s0, 256, %s15_s7, [#allocation3]  }
  0x11   :  { %96 = dma.done.wait [#allocation3], 256  }
  0x12   :  { %97 = vsyncadd [#allocation3], 4294967040  ;;  %v21_v0 = vld [vmem:[#allocation2] sm:$0xff]  ;;  %v22_v1 = vld [vmem:[#allocation2 + $0x8] sm:$0xff]  ;;  %s101_s18 = smov [#allocation5]  }
  0x13   :  { %v23_v2 = vadd.f32 3.0, %v21_v0  ;;  %v24_v3 = vadd.f32 3.0, %v22_v1  ;;  %s41_s19 = sshll.u32 %s101_s18, 4  ;;  %s42_s19 = int_to_ptr.vmem [resolvable:$true] %s41_s19 }
  0x14   :  { %s74_s0 = scalar_lea.vmem %s42_s19, 256  ;;  %p79_p9 = scmp.lt.s32.totalorder %s42_s19, %s42_s19 }
  0x15   :  { %v25_v4 = vmax.f32 %v23_v2, 0.0  ;;  %v26_v5 = vmax.f32 %v24_v3, 0.0  ;;  %p75_p8 = scmp.ne.s32.totalorder %s42_s19, %s74_s0  ;;  %p80_p10 = scmp.lt.s32.totalorder %s74_s0, %s74_s0 }
  0x17   :  { %v27_v6 = vmin.f32 %v25_v4, 6.0  ;;  %v28_v7 = vmin.f32 %v26_v5, 6.0  ;;  %p81_p11 = por %p80_p10, %p79_p9 }
  0x19   :  { %v29_v8 = vmul.f32 0.16666667, %v27_v6  ;;  %v30_v9 = vmul.f32 0.16666667, %v28_v7  ;;  %p82_p12 = pnand %p81_p11, %p75_p8 }
  0x1b   :  { %v31_v10 = vmul.f32 %v29_v8, %v21_v0  ;;  %v32_v11 = vmul.f32 %v30_v9, %v22_v1 }
  0x1d   :  { %33 = vst [vmem:[#allocation5] sm:$0xff] %v31_v10  ;;  %34 = vst [vmem:[#allocation5 + $0x8] sm:$0xff] %v32_v11 }
  0x1e   :  { %85 = shalt.err (!%p82_p12)
}
  0x1f   :  { %s86_s22 = scalar_lea.hbm %s137_s1, 256 }
  0x20   :  { %p87_p13 = scmp.ne.s32.totalorder %s137_s1, %s86_s22  ;;  %p90_p0 = scmp.lt.u32.totalorder %s86_s22, %s137_s1 }
  0x22   :  { %p92_p1 = pnand %p90_p0, %p87_p13 }
  0x24   :  { %95 = shalt.err (!%p92_p1)
}
  0x25   :  { %44 = dma.vmem_to_hbm [thread:$0]  %s42_s19, 256, %s137_s1, [#allocation4]  }
  0x26   :  { %98 = dma.done.wait [#allocation4], 256  }
  0x27   :  { %99 = vsyncadd [#allocation4], 4294967040 }
  0x28   :  { %48 = vsyncpa [#allocation3], 1 }
  0x29   :  { %49 = vsyncpa [#allocation4], 1 }

</bundles_post_ra>
